<compile_context>
chip_gen: v5e
topology: v5e:2x2
jax: 0.10.0
libtpu: 0.0.40
codegen_flags: <defaults>
</compile_context>

<pallas_src>
import jax
import jax.numpy as jnp
from jax import lax
from jax.experimental import pallas as pl
from jax.experimental.pallas import tpu as pltpu

ADV_STEP_SIZE = 0.001

# Above this many prompt rows, the B-way VPU select would make the kernel
# VALU-bound (at B~4 on v7x, ~10 on v6e), so switch to the MXU one-hot gather.
_SELECT_CHAIN_MAX_B = 8


def _round_up(v: int, m: int) -> int:
    return ((v + m - 1) // m) * m


def _prompt_kernel(x_ref, idx_ref, b_ref, o_ref):
    """o = x + b[idx] with b fully resident in VMEM.

    Small B: pure select chain on the VPU (one vselect per prompt row).
    Large B: one-hot matmul on the otherwise-idle MXU, f32 accumulation.
    """
    idx = idx_ref[...]                       # (TM, 1) int32
    tm = x_ref.shape[0]
    num_prompts = b_ref.shape[0]             # static, typically small

    if num_prompts <= _SELECT_CHAIN_MAX_B:
        # Select chain: rows with idx == 0 (or out-of-range idx in the masked
        # boundary block) keep row 0; each k>0 overwrites via one vselect.
        gathered = b_ref[0, :]                               # (L,)
        for k in range(1, num_prompts):
            gathered = jnp.where(idx == k, b_ref[k, :], gathered)
        # TODO(synk): stride-0 sublane-broadcast loads (pl.ds(k, tm, stride=0))
        # could shift the broadcast onto the vld slots if VALU ever binds here.
    else:
        # One-hot gather on the MXU: exact for f32 b (one-hot is exactly 0/1,
        # HIGHEST precision keeps the f32 decomposition lossless).
        iota = lax.broadcasted_iota(jnp.int32, (tm, num_prompts), 1)
        one_hot = (iota == idx).astype(jnp.float32)          # (TM, B)
        gathered = jnp.dot(
            one_hot,
            b_ref[...].astype(jnp.float32),
            precision=lax.Precision.HIGHEST,
            preferred_element_type=jnp.float32,
        )                                                     # (TM, L)

    o_ref[...] = x_ref[...] + gathered.astype(o_ref.dtype)


def prompt_forward(
    x: jax.Array,
    batch: jax.Array,
    b: jax.Array,
    *,
    tm: int | None = None,
    target_block_bytes: int = 2 * 1024 * 1024,
    vmem_budget_bytes: int = 48 * 1024 * 1024,
) -> jax.Array:
    """Computes x + b[batch] with a Pallas TPU kernel.

    x:     (N, L) float
    batch: (N,)   int indices into rows of b
    b:     (B, L) float parameter

    vmem_budget_bytes defaults to 48 MiB (safe on v7x's 64 MiB/TC physical
    VMEM); on v5e/v6e it may be raised toward 64-96 MiB for very large L.
    """
    n, length = x.shape
    bsz, l2 = b.shape
    assert l2 == length, "b and x must share the trailing `length` dimension"
    assert batch.shape == (n,)

    itemsize = jnp.dtype(x.dtype).itemsize
    b_itemsize = jnp.dtype(b.dtype).itemsize
    min_sub = max(8, 32 // itemsize)          # 8 rows for f32, 16 for bf16

    if tm is None:
        # Fixed VMEM footprint (b is double-buffered by default even though it
        # is fetched once; idx tiles are tiny and folded into bytes_per_row).
        fixed_bytes = 2 * bsz * length * b_itemsize
        avail = max(vmem_budget_bytes - fixed_bytes, 1 * 1024 * 1024)
        # Per extra row of tile: x + out, each double-buffered, plus idx (i32).
        bytes_per_row = 2 * 2 * length * itemsize + 2 * 4
        tm_vmem = avail // max(bytes_per_row, 1)
        # Aim for ~2 MiB x/out blocks (per the measured tile-size sweep).
        tm_target = max(target_block_bytes // max(length * itemsize, 1), min_sub)
        tm = min(tm_vmem, tm_target)
    tm = min(tm, _round_up(n, min_sub))       # never bigger than the row count
    tm = max(min_sub, (tm // min_sub) * min_sub)
    # TODO(synk): for very large `length`, also tile the lane axis instead of
    # taking the whole row per block.

    idx2d = batch.astype(jnp.int32).reshape(n, 1)
    grid = (pl.cdiv(n, tm),)                  # ragged tail handled by Pallas

    vmem_limit = min(vmem_budget_bytes + (8 << 20), 96 << 20)

    out = pl.pallas_call(
        _prompt_kernel,
        out_shape=jax.ShapeDtypeStruct((n, length), x.dtype),
        grid_spec=pltpu.PrefetchScalarGridSpec(
            num_scalar_prefetch=0,
            grid=grid,
            in_specs=[
                # row tile of x (lane dim == full array dim: no padding needed)
                pl.BlockSpec((tm, length), lambda i: (i, 0)),
                # matching tile of per-row prompt indices
                pl.BlockSpec((tm, 1), lambda i: (i, 0)),
                # whole prompt parameter b, resident in VMEM across the grid
                pl.BlockSpec((bsz, length), lambda i: (0, 0)),
            ],
            out_specs=pl.BlockSpec((tm, length), lambda i: (i, 0)),
        ),
        compiler_params=pltpu.CompilerParams(
            dimension_semantics=("parallel",),
            vmem_limit_bytes=vmem_limit,
        ),
    )(x, idx2d, b)

    return out


def init_prompt_params(key, batch_size: int, length: int,
                       interval=(-ADV_STEP_SIZE, ADV_STEP_SIZE)) -> jax.Array:
    lo, hi = interval
    return jax.random.uniform(
        key, (batch_size, length), dtype=jnp.float32, minval=lo, maxval=hi
    )


if __name__ == "__main__":
    key = jax.random.PRNGKey(0)
    k_b, k_x, k_idx, k_b2, k_x2, k_idx2 = jax.random.split(key, 6)

    # --- check 1: small shapes, select-chain gather path (B <= 8) ---------
    batch_size, length, n = 4, 128, 8
    b = init_prompt_params(k_b, batch_size, length)
    x = jax.random.normal(k_x, (n, length), dtype=jnp.float32)
    batch = jax.random.randint(k_idx, (n,), 0, batch_size, dtype=jnp.int32)

    out = jax.block_until_ready(prompt_forward(x, batch, b))
    ref = x + b[batch]
    assert out.shape == (n, length)
    assert jnp.allclose(out, ref, atol=1e-6, rtol=1e-6)

    # --- check 2: MXU one-hot gather path (B > 8), ragged N, L % 128 != 0,
    #     forced small row tile so the clipped boundary block is exercised ---
    batch_size2, length2, n2 = 12, 160, 24
    b2 = init_prompt_params(k_b2, batch_size2, length2)
    x2 = jax.random.normal(k_x2, (n2, length2), dtype=jnp.float32)
    batch2 = jax.random.randint(k_idx2, (n2,), 0, batch_size2, dtype=jnp.int32)

    out2 = jax.block_until_ready(prompt_forward(x2, batch2, b2, tm=16))
    ref2 = x2 + b2[batch2]
    assert out2.shape == (n2, length2)
    assert jnp.allclose(out2, ref2, atol=1e-6, rtol=1e-6)

    print("KERNEL_OK")
</pallas_src>

<mosaic_0001>
module attributes {stable_mosaic.version = 11 : i64} {
  func.func @_prompt_kernel(%arg0: i32, %arg1: memref<8x128xf32, #tpu.memory_space<vmem>>, %arg2: memref<8x1xi32, #tpu.memory_space<vmem>>, %arg3: memref<4x128xf32, #tpu.memory_space<vmem>>, %arg4: memref<8x128xf32, #tpu.memory_space<vmem>>) attributes {dimension_semantics = [#tpu.dimension_semantics<parallel>], iteration_bounds = array<i64: 1>, scalar_prefetch = 0 : i64, scratch_operands = 0 : i64, tpu.core_type = #tpu.core_type<tc>, window_params = [{transform_indices = @transform_0, window_bounds = array<i64: 8, 128>}, {transform_indices = @transform_1, window_bounds = array<i64: 8, 1>}, {pipeline_mode = #tpu.pipeline_mode<synchronous>, transform_indices = @transform_2, window_bounds = array<i64: 4, 128>}, {transform_indices = @transform_3, window_bounds = array<i64: 8, 128>}]} {
    %c0 = arith.constant 0 : index
    %c0_0 = arith.constant 0 : index
    %0 = vector.load %arg2[%c0, %c0_0] : memref<8x1xi32, #tpu.memory_space<vmem>>, vector<8x1xi32>
    %c0_1 = arith.constant 0 : index
    %c0_2 = arith.constant 0 : index
    %1 = vector.load %arg3[%c0_1, %c0_2] : memref<4x128xf32, #tpu.memory_space<vmem>>, vector<1x128xf32>
    %2 = vector.shape_cast %1 : vector<1x128xf32> to vector<128xf32>
    %c1_i32 = arith.constant 1 : i32
    %3 = vector.broadcast %c1_i32 : i32 to vector<8x1xi32>
    %4 = arith.cmpi eq, %0, %3 : vector<8x1xi32>
    %c1 = arith.constant 1 : index
    %c0_3 = arith.constant 0 : index
    %5 = vector.load %arg3[%c1, %c0_3] : memref<4x128xf32, #tpu.memory_space<vmem>>, vector<1x128xf32>
    %6 = vector.shape_cast %5 : vector<1x128xf32> to vector<128xf32>
    %7 = vector.shape_cast %4 : vector<8x1xi1> to vector<8x1xi1>
    %8 = vector.broadcast %7 : vector<8x1xi1> to vector<8x128xi1>
    %9 = vector.shape_cast %6 : vector<128xf32> to vector<1x128xf32>
    %10 = vector.broadcast %9 : vector<1x128xf32> to vector<8x128xf32>
    %11 = vector.shape_cast %2 : vector<128xf32> to vector<1x128xf32>
    %12 = vector.broadcast %11 : vector<1x128xf32> to vector<8x128xf32>
    %13 = arith.select %8, %10, %12 : vector<8x128xi1>, vector<8x128xf32>
    %c2_i32 = arith.constant 2 : i32
    %14 = vector.broadcast %c2_i32 : i32 to vector<8x1xi32>
    %15 = arith.cmpi eq, %0, %14 : vector<8x1xi32>
    %c2 = arith.constant 2 : index
    %c0_4 = arith.constant 0 : index
    %16 = vector.load %arg3[%c2, %c0_4] : memref<4x128xf32, #tpu.memory_space<vmem>>, vector<1x128xf32>
    %17 = vector.shape_cast %16 : vector<1x128xf32> to vector<128xf32>
    %18 = vector.shape_cast %15 : vector<8x1xi1> to vector<8x1xi1>
    %19 = vector.broadcast %18 : vector<8x1xi1> to vector<8x128xi1>
    %20 = vector.shape_cast %17 : vector<128xf32> to vector<1x128xf32>
    %21 = vector.broadcast %20 : vector<1x128xf32> to vector<8x128xf32>
    %22 = arith.select %19, %21, %13 : vector<8x128xi1>, vector<8x128xf32>
    %c3_i32 = arith.constant 3 : i32
    %23 = vector.broadcast %c3_i32 : i32 to vector<8x1xi32>
    %24 = arith.cmpi eq, %0, %23 : vector<8x1xi32>
    %c3 = arith.constant 3 : index
    %c0_5 = arith.constant 0 : index
    %25 = vector.load %arg3[%c3, %c0_5] : memref<4x128xf32, #tpu.memory_space<vmem>>, vector<1x128xf32>
    %26 = vector.shape_cast %25 : vector<1x128xf32> to vector<128xf32>
    %27 = vector.shape_cast %24 : vector<8x1xi1> to vector<8x1xi1>
    %28 = vector.broadcast %27 : vector<8x1xi1> to vector<8x128xi1>
    %29 = vector.shape_cast %26 : vector<128xf32> to vector<1x128xf32>
    %30 = vector.broadcast %29 : vector<1x128xf32> to vector<8x128xf32>
    %31 = arith.select %28, %30, %22 : vector<8x128xi1>, vector<8x128xf32>
    %c0_6 = arith.constant 0 : index
    %c0_7 = arith.constant 0 : index
    %32 = vector.load %arg1[%c0_6, %c0_7] : memref<8x128xf32, #tpu.memory_space<vmem>>, vector<8x128xf32>
    %33 = arith.addf %32, %31 : vector<8x128xf32>
    %c0_8 = arith.constant 0 : index
    %c0_9 = arith.constant 0 : index
    %34 = vector.load %arg4[%c0_8, %c0_9] : memref<8x128xf32, #tpu.memory_space<vmem>>, vector<8x128xf32>
    tpu.vector_store %arg4[%c0_8, %c0_9], %33 {strides = array<i32>} : memref<8x128xf32, #tpu.memory_space<vmem>>, vector<8x128xf32>,
    return
  }
  func.func @transform_0(%arg0: i32) -> (i32, i32) {
    %c0_i32 = arith.constant 0 : i32
    %c0_i32_0 = arith.constant 0 : i32
    return %arg0, %c0_i32 : i32, i32
  }
  func.func @transform_1(%arg0: i32) -> (i32, i32) {
    %c0_i32 = arith.constant 0 : i32
    %c0_i32_0 = arith.constant 0 : i32
    return %arg0, %c0_i32 : i32, i32
  }
  func.func @transform_2(%arg0: i32) -> (i32, i32) {
    %c0_i32 = arith.constant 0 : i32
    %c0_i32_0 = arith.constant 0 : i32
    %c0_i32_1 = arith.constant 0 : i32
    return %c0_i32, %c0_i32_0 : i32, i32
  }
  func.func @transform_3(%arg0: i32) -> (i32, i32) {
    %c0_i32 = arith.constant 0 : i32
    %c0_i32_0 = arith.constant 0 : i32
    return %arg0, %c0_i32 : i32, i32
  }
}

</mosaic_0001>

<bundles_post_ra>
// kernel: tpu_custom_call.1
= control target key start
LH: loop header
LB: loop body
LE: loop exit
PB: predicated region body
PF: predicated region fallthrough
CT: control target
= control target key end

     0   :  { %8 = vsyncpa [#allocation3], 0  ;;  %s175_s0 = inlined_call_operand.vmem [shape: f32[8,128], index: 0, kind: input, shape index: {}]   ;;  %s176_s1 = inlined_call_operand.vmem [shape: s32[8,1], index: 1, kind: input, shape index: {}]   ;;  %s177_s2 = inlined_call_operand.hbm [shape: f32[4,128], index: 2, kind: input, shape index: {}]   ;;  %s178_s3 = inlined_call_operand.hbm [shape: f32[8,128], index: 3, kind: output, shape index: {}]  }
   0x1   :  { %9 = vsyncpa [#allocation4], 0  ;;  %s19_s14 = sshll.u32 %s177_s2, 4  ;;  %s140_s15 = smov [#allocation2]   ;;  %s20_s14 = int_to_ptr.hbm [resolvable:$true] %s19_s14 }
   0x2   :  { %s21_s16 = sshll.u32 %s140_s15, 4  ;;  %s22_s16 = int_to_ptr.vmem [resolvable:$true] %s21_s16 }
   0x3   :  { %24 = dma.hbm_to_vmem [thread:$0]  %s20_s14, 64, %s22_s16, [#allocation3]  }
   0x4   :  { %136 = dma.done.wait [#allocation3], 64  }
   0x5   :  { %137 = vsyncadd [#allocation3], 4294967232  ;;  %v141_v0 = vmov 0   ;;  %v29_v1 = vld [vmem:[%s176_s1] sm:$0xff]  ;;  %s142_s19 = smov [#allocation5]   ;;  %s69_s23 = sshll.u32 %s178_s3, 4  ;;  %s70_s23 = int_to_ptr.hbm [resolvable:$true] %s69_s23 }
   0x6   :  { %82 = vset.pattern.permute.xlu0 %v141_v0  ;;  %83 = vset.pattern.permute.xlu1 %v141_v0  ;;  %vm31_vm0 = vcmp.eq.s32.totalorder %v29_v1, 1  ;;  %vm50_vm1 = vcmp.eq.s32.totalorder %v29_v1, 3  ;;  %vm41_vm2 = vcmp.eq.s32.totalorder %v29_v1, 2  ;;  %v84_v6 = vld [vmem:[#allocation2 + $0x1] ss:$0 sm:$0xff]  ;;  %s67_s20 = sshll.u32 %s142_s19, 4  ;;  %s68_s20 = int_to_ptr.vmem [resolvable:$true] %s67_s20 }
   0x7   :  { %v33_v2 = vsel %vm31_vm0, 1, %v141_v0  ;;  %v52_v3 = vsel %vm50_vm1, 1, %v141_v0  ;;  %v43_v4 = vsel %vm41_vm2, 1, %v141_v0  ;;  %v85_v7 = vld [vmem:[#allocation2] ss:$0 sm:$0xff] }
   0x8   :  { %35 = vperm.xlu0 %82, %v33_v2   ;;  %54 = vperm.xlu1 %83, %v52_v3   ;;  %v86_v9 = vld [vmem:[#allocation2 + $0x2] ss:$0 sm:$0xff]  ;;  %v87_v10 = vld [vmem:[#allocation2 + $0x3] ss:$0 sm:$0xff] }
   0x9   :  { %v59_v13 = vld [vmem:[%s175_s0] sm:$0xff] }
  0x10   :  { %45 = vperm.xlu0 %82, %v43_v4  }
  0x7a   :  { %v36_v5 = vpop.permute.xlu0 %35  ;;  %v55_v8 = vpop.permute.xlu1 %54 }
  0x7b   :  { %vm37_vm3 = vcmp.eq.s32.totalorder %v36_v5, 1  ;;  %vm56_vm4 = vcmp.eq.s32.totalorder %v55_v8, 1 }
  0x7c   :  { %v40_v12 = vsel %vm37_vm3, %v84_v6, %v85_v7 }
  0x82   :  { %v46_v11 = vpop.permute.xlu0 %45 }
  0x83   :  { %vm47_vm5 = vcmp.eq.s32.totalorder %v46_v11, 1 }
  0x84   :  { %v49_v14 = vsel %vm47_vm5, %v86_v9, %v40_v12 }
  0x85   :  { %v58_v15 = vsel %vm56_vm4, %v87_v10, %v49_v14 }
  0x86   :  { %v60_v16 = vadd.f32 %v59_v13, %v58_v15 }
  0x88   :  { %61 = vst [vmem:[#allocation5] sm:$0xff] %v60_v16 }
  0x89   :  { %72 = dma.vmem_to_hbm [thread:$0]  %s68_s20, 128, %s70_s23, [#allocation4]  }
  0x8a   :  { %138 = dma.done.wait [#allocation4], 128  }
  0x8b   :  { %139 = vsyncadd [#allocation4], 4294967168 }
  0x8c   :  { %77 = vsyncpa [#allocation3], 1 }
  0x8d   :  { %78 = vsyncpa [#allocation4], 1 }

</bundles_post_ra>
